<compile_context>
chip_gen: v7x
topology: tpu7x:2x2x1
jax: 0.10.0
libtpu: 0.0.40
codegen_flags: <defaults>
</compile_context>

<pallas_src>
import functools

import jax
import jax.numpy as jnp
from jax import lax
from jax.experimental import pallas as pl
from jax.experimental.pallas import tpu as pltpu


def _round_up(x, m):
    return ((x + m - 1) // m) * m


def _fcn_norm_kernel(x_ref, w1_ref, w2_ref, o_ref, *, h_true):
    # fc1: (TM, in_p) @ (in_p, h_p) on the MXU, fp32 accumulation.
    h = jnp.dot(x_ref[...], w1_ref[...], preferred_element_type=jnp.float32)
    # nnPower(2)
    h = h * h
    # LayerNorm over the true (unpadded) feature width.
    inv_n = jnp.float32(1.0 / h_true)
    # Padded columns of h are exactly 0 (w1 columns zero-padded), so the plain
    # row-sum already equals the sum over the true h_true columns.
    mean = jnp.sum(h, axis=-1, keepdims=True) * inv_n
    d = h - mean
    # Mask padded columns out of the variance (they would add mean^2 each).
    col = lax.broadcasted_iota(jnp.int32, d.shape, 1)
    d = jnp.where(col < h_true, d, jnp.float32(0.0))
    var = jnp.sum(d * d, axis=-1, keepdims=True) * inv_n
    h_norm = d * lax.rsqrt(var + jnp.float32(1e-5))
    # fc2: padded rows of w2 are zero, so zeroed padded h_norm columns are inert.
    out = jnp.dot(h_norm.astype(w2_ref.dtype), w2_ref[...],
                  preferred_element_type=jnp.float32)
    o_ref[...] = out.astype(o_ref.dtype)


def fcn_norm_forward(x, w1, w2, *, vmem_budget_bytes=24 * 1024 * 1024):
    """x: (B, ...) flattened to (B, in_size); w1: (in_size, h_size); w2: (h_size, out_size)."""
    x2d = x.reshape(x.shape[0], -1)          # torch .flatten(1)
    B, in_size = x2d.shape
    in_w1, h_size = w1.shape
    h_w2, out_size = w2.shape
    assert in_w1 == in_size and h_w2 == h_size

    dtype = x2d.dtype
    bytes_per = jnp.dtype(dtype).itemsize

    # Lane-dense padding of the feature dims.
    in_p = _round_up(in_size, 128)
    h_p = _round_up(h_size, 128)
    out_p = _round_up(out_size, 128)

    # Pick the batch tile: weights are VMEM-resident once, x/out tiles are
    # double-buffered, f32 intermediates for the (TM, h_p) activation.
    b_min = _round_up(B, 8)
    weight_bytes = (in_p * h_p + h_p * out_p) * bytes_per
    tm = 512
    while tm > 8:
        act_bytes = 2 * tm * (in_p + out_p) * bytes_per + 2 * tm * h_p * 4
        if weight_bytes + act_bytes <= vmem_budget_bytes:
            break
        tm //= 2
    tm = min(tm, b_min)
    b_p = _round_up(B, tm)
    grid = (b_p // tm,)

    # Zero-pad operands (padding is mathematically inert, see kernel comments).
    xp = jnp.zeros((b_p, in_p), dtype).at[:B, :in_size].set(x2d)
    w1p = jnp.zeros((in_p, h_p), w1.dtype).at[:in_size, :h_size].set(w1)
    w2p = jnp.zeros((h_p, out_p), w2.dtype).at[:h_size, :out_size].set(w2)

    kernel = functools.partial(_fcn_norm_kernel, h_true=h_size)
    out_padded = pl.pallas_call(
        kernel,
        out_shape=jax.ShapeDtypeStruct((b_p, out_p), dtype),
        grid=grid,
        in_specs=[
            pl.BlockSpec((tm, in_p), lambda i: (i, 0)),     # batch-tiled input
            pl.BlockSpec((in_p, h_p), lambda i: (0, 0)),    # w1 resident
            pl.BlockSpec((h_p, out_p), lambda i: (0, 0)),   # w2 resident
        ],
        out_specs=pl.BlockSpec((tm, out_p), lambda i: (i, 0)),
        compiler_params=pltpu.CompilerParams(
            dimension_semantics=("parallel",),              # megacore split on v7x
            vmem_limit_bytes=32 * 1024 * 1024,
        ),
    )(xp, w1p, w2p)
    return out_padded[:B, :out_size]


if __name__ == "__main__":
    # Small, module-consistent shapes: x is (B, C, H, W) and gets flattened to
    # (B, in_size) just like `x.flatten(1)` in the PyTorch module.
    B, C, H, W = 8, 2, 4, 4
    in_size = C * H * W          # 32
    h_size, out_size = 64, 16

    key = jax.random.PRNGKey(0)
    k_x, k_w1, k_w2 = jax.random.split(key, 3)

    # Deterministic init matching the PyTorch __init__:
    #   normal(mean=0, std=0.25**0.5 / (2*h_size)**(1/3))
    std = (0.25 ** 0.5) / ((2.0 * h_size) ** (1.0 / 3.0))
    # PyTorch Linear weight is (out_features, in_features); store the transpose
    # so the kernel multiplies x @ W directly.
    w1 = (std * jax.random.normal(k_w1, (h_size, in_size), jnp.float32)).T  # (in, h)
    w2 = (std * jax.random.normal(k_w2, (out_size, h_size), jnp.float32)).T  # (h, out)

    x = jax.random.normal(k_x, (B, C, H, W), jnp.float32)

    out = jax.block_until_ready(fcn_norm_forward(x, w1, w2))

    # Pure-JAX reference.
    x2d = x.reshape(B, -1)
    h_ref = x2d @ w1
    h_ref = h_ref ** 2
    mu = h_ref.mean(-1, keepdims=True)
    var = ((h_ref - mu) ** 2).mean(-1, keepdims=True)
    h_ref = (h_ref - mu) / jnp.sqrt(var + 1e-5)
    ref = h_ref @ w2

    assert out.shape == (B, out_size)
    assert jnp.allclose(out, ref, atol=1e-4, rtol=1e-4)
    print("KERNEL_OK")
</pallas_src>

<mosaic_0001>
module attributes {stable_mosaic.version = 11 : i64} {
  func.func @_fcn_norm_kernel(%arg0: i32, %arg1: memref<8x128xf32, #tpu.memory_space<vmem>>, %arg2: memref<128x128xf32, #tpu.memory_space<vmem>>, %arg3: memref<128x128xf32, #tpu.memory_space<vmem>>, %arg4: memref<8x128xf32, #tpu.memory_space<vmem>>) attributes {dimension_semantics = [#tpu.dimension_semantics<parallel>], iteration_bounds = array<i64: 1>, scalar_prefetch = 0 : i64, scratch_operands = 0 : i64, tpu.core_type = #tpu.core_type<tc>, window_params = [{transform_indices = @transform_0, window_bounds = array<i64: 8, 128>}, {pipeline_mode = #tpu.pipeline_mode<synchronous>, transform_indices = @transform_1, window_bounds = array<i64: 128, 128>}, {pipeline_mode = #tpu.pipeline_mode<synchronous>, transform_indices = @transform_2, window_bounds = array<i64: 128, 128>}, {transform_indices = @transform_3, window_bounds = array<i64: 8, 128>}]} {
    %c0 = arith.constant 0 : index
    %c0_0 = arith.constant 0 : index
    %0 = vector.load %arg1[%c0, %c0_0] : memref<8x128xf32, #tpu.memory_space<vmem>>, vector<8x128xf32>
    %c0_1 = arith.constant 0 : index
    %c0_2 = arith.constant 0 : index
    %1 = vector.load %arg2[%c0_1, %c0_2] : memref<128x128xf32, #tpu.memory_space<vmem>>, vector<128x128xf32>
    %cst = arith.constant dense<0.000000e+00> : vector<8x128xf32>
    %2 = tpu.matmul %0, %1, %cst {dimension_numbers = #tpu.dot_dimension_numbers<[1], [0], [0], [1], [0, 0, 1, 1], [], []>} : vector<8x128xf32>, vector<128x128xf32>, vector<8x128xf32> -> vector<8x128xf32>
    %3 = arith.mulf %2, %2 : vector<8x128xf32>
    %cst_3 = arith.constant dense<0.000000e+00> : vector<8xf32>
    %4 = vector.multi_reduction <add>, %3, %cst_3 [1] : vector<8x128xf32> to vector<8xf32>
    %5 = vector.shape_cast %4 : vector<8xf32> to vector<8x1xf32>
    %cst_4 = arith.constant 1.562500e-02 : f32
    %6 = vector.broadcast %cst_4 : f32 to vector<8x1xf32>
    %7 = arith.mulf %5, %6 : vector<8x1xf32>
    %8 = vector.broadcast %7 : vector<8x1xf32> to vector<8x128xf32>
    %9 = arith.subf %3, %8 : vector<8x128xf32>
    %10 = tpu.iota {dimensions = array<i32: 1>} : vector<8x128xi32>
    %c64_i32 = arith.constant 64 : i32
    %11 = vector.broadcast %c64_i32 : i32 to vector<8x128xi32>
    %12 = arith.cmpi slt, %10, %11 : vector<8x128xi32>
    %cst_5 = arith.constant 0.000000e+00 : f32
    %13 = vector.broadcast %cst_5 : f32 to vector<8x128xf32>
    %14 = arith.select %12, %9, %13 : vector<8x128xi1>, vector<8x128xf32>
    %15 = arith.mulf %14, %14 : vector<8x128xf32>
    %cst_6 = arith.constant dense<0.000000e+00> : vector<8xf32>
    %16 = vector.multi_reduction <add>, %15, %cst_6 [1] : vector<8x128xf32> to vector<8xf32>
    %17 = vector.shape_cast %16 : vector<8xf32> to vector<8x1xf32>
    %cst_7 = arith.constant 1.562500e-02 : f32
    %18 = vector.broadcast %cst_7 : f32 to vector<8x1xf32>
    %19 = arith.mulf %17, %18 : vector<8x1xf32>
    %cst_8 = arith.constant 9.99999974E-6 : f32
    %20 = vector.broadcast %cst_8 : f32 to vector<8x1xf32>
    %21 = arith.addf %19, %20 : vector<8x1xf32>
    %22 = math.rsqrt %21 : vector<8x1xf32>
    %23 = vector.broadcast %22 : vector<8x1xf32> to vector<8x128xf32>
    %24 = arith.mulf %14, %23 : vector<8x128xf32>
    %c0_9 = arith.constant 0 : index
    %c0_10 = arith.constant 0 : index
    %25 = vector.load %arg3[%c0_9, %c0_10] : memref<128x128xf32, #tpu.memory_space<vmem>>, vector<128x128xf32>
    %cst_11 = arith.constant dense<0.000000e+00> : vector<8x128xf32>
    %26 = tpu.matmul %24, %25, %cst_11 {dimension_numbers = #tpu.dot_dimension_numbers<[1], [0], [0], [1], [0, 0, 1, 1], [], []>} : vector<8x128xf32>, vector<128x128xf32>, vector<8x128xf32> -> vector<8x128xf32>
    %c0_12 = arith.constant 0 : index
    %c0_13 = arith.constant 0 : index
    %27 = vector.load %arg4[%c0_12, %c0_13] : memref<8x128xf32, #tpu.memory_space<vmem>>, vector<8x128xf32>
    tpu.vector_store %arg4[%c0_12, %c0_13], %26 {strides = array<i32>} : memref<8x128xf32, #tpu.memory_space<vmem>>, vector<8x128xf32>,
    return
  }
  func.func @transform_0(%arg0: i32) -> (i32, i32) {
    %c0_i32 = arith.constant 0 : i32
    %c0_i32_0 = arith.constant 0 : i32
    return %arg0, %c0_i32 : i32, i32
  }
  func.func @transform_1(%arg0: i32) -> (i32, i32) {
    %c0_i32 = arith.constant 0 : i32
    %c0_i32_0 = arith.constant 0 : i32
    %c0_i32_1 = arith.constant 0 : i32
    return %c0_i32, %c0_i32_0 : i32, i32
  }
  func.func @transform_2(%arg0: i32) -> (i32, i32) {
    %c0_i32 = arith.constant 0 : i32
    %c0_i32_0 = arith.constant 0 : i32
    %c0_i32_1 = arith.constant 0 : i32
    return %c0_i32, %c0_i32_0 : i32, i32
  }
  func.func @transform_3(%arg0: i32) -> (i32, i32) {
    %c0_i32 = arith.constant 0 : i32
    %c0_i32_0 = arith.constant 0 : i32
    return %arg0, %c0_i32 : i32, i32
  }
}

</mosaic_0001>

<bundles_post_ra>
// kernel: tpu_custom_call.1
= control target key start
LH: loop header
LB: loop body
LE: loop exit
PB: predicated region body
PF: predicated region fallthrough
CT: control target
= control target key end

     0   :  { %8 = vsyncpa [#allocation3], 0  ;;  %s616_s0 = inlined_call_operand.hbm [shape: f32[8,128], index: 0, kind: input, shape index: {}]   ;;  %s617_s1 = inlined_call_operand.hbm [shape: f32[128,128], index: 1, kind: input, shape index: {}]   ;;  %s618_s2 = inlined_call_operand.hbm [shape: f32[128,128], index: 2, kind: input, shape index: {}]   ;;  %s619_s3 = inlined_call_operand.hbm [shape: f32[8,128], index: 3, kind: output, shape index: {}]  }
   0x1   :  { %9 = vsyncpa [#allocation6], 0 }
   0x2   :  { %10 = vsyncpa [#allocation4], 0  ;;  %s517_s12 = smov [#allocation5]   ;;  %s423_s16 = scalar_lea.hbm %s617_s1, 2048 }
   0x3   :  { %s26_s13 = sshll.u32 %s517_s12, 4  ;;  %p424_p0 = scmp.ne.s32.totalorder %s617_s1, %s423_s16  ;;  %s27_s13 = int_to_ptr.vmem [resolvable:$true] %s26_s13 }
   0x4   :  { %p427_p1 = scmp.lt.u32.totalorder %s423_s16, %s617_s1 }
   0x6   :  { %p429_p2 = pnand %p427_p1, %p424_p0 }
   0x8   :  { %432 = shalt.err (!%p429_p2)
}
   0x9   :  { %s433_s21 = scalar_lea.vmem %s27_s13, 2048  ;;  %p438_p4 = scmp.lt.s32.totalorder %s27_s13, %s27_s13 }
   0xa   :  { %p434_p3 = scmp.ne.s32.totalorder %s27_s13, %s433_s21  ;;  %p439_p5 = scmp.lt.s32.totalorder %s433_s21, %s433_s21 }
   0xc   :  { %p440_p6 = por %p439_p5, %p438_p4 }
   0xe   :  { %p441_p7 = pnand %p440_p6, %p434_p3 }
  0x10   :  { %444 = shalt.err (!%p441_p7)
}
  0x11   :  { %s518_s22 = smov 128   ;;  %s519_s23 = smov 8  }
  0x12   :  { %32 = dma.hbm_to_vmem [thread:$0]  %s617_s1, 2048, %s27_s13, [#allocation6], %s518_s22, %s518_s22, %s519_s23  }
  0x13   :  { %s520_s26 = smov [#allocation2]   ;;  %s521_s28 = smov [#allocation7]  }
  0x14   :  { %s17_s27 = sshll.u32 %s520_s26, 4  ;;  %s38_s29 = sshll.u32 %s521_s28, 4  ;;  %s18_s27 = int_to_ptr.vmem [resolvable:$true] %s17_s27  ;;  %s39_s29 = int_to_ptr.vmem [resolvable:$true] %s38_s29 }
  0x15   :  { %s445_s5 = scalar_lea.hbm %s616_s0, 128 }
  0x16   :  { %p446_p8 = scmp.ne.s32.totalorder %s616_s0, %s445_s5  ;;  %p449_p9 = scmp.lt.u32.totalorder %s445_s5, %s616_s0 }
  0x18   :  { %p451_p10 = pnand %p449_p9, %p446_p8 }
  0x1a   :  { %454 = shalt.err (!%p451_p10)
}
  0x1b   :  { %s455_s1 = scalar_lea.vmem %s18_s27, 128  ;;  %p460_p12 = scmp.lt.s32.totalorder %s18_s27, %s18_s27 }
  0x1c   :  { %p456_p11 = scmp.ne.s32.totalorder %s18_s27, %s455_s1  ;;  %p461_p13 = scmp.lt.s32.totalorder %s455_s1, %s455_s1 }
  0x1e   :  { %p462_p0 = por %p461_p13, %p460_p12 }
  0x20   :  { %p463_p1 = pnand %p462_p0, %p456_p11 }
  0x22   :  { %466 = shalt.err (!%p463_p1)
}
  0x23   :  { %20 = dma.hbm_to_vmem [thread:$0]  %s616_s0, 128, %s18_s27, [#allocation3]  }
  0x24   :  { %s467_s14 = scalar_lea.hbm %s618_s2, 2048 }
  0x25   :  { %p468_p2 = scmp.ne.s32.totalorder %s618_s2, %s467_s14  ;;  %p471_p3 = scmp.lt.u32.totalorder %s467_s14, %s618_s2 }
  0x27   :  { %p473_p4 = pnand %p471_p3, %p468_p2 }
  0x29   :  { %476 = shalt.err (!%p473_p4)
}
  0x2a   :  { %s477_s19 = scalar_lea.vmem %s39_s29, 2048  ;;  %p482_p6 = scmp.lt.s32.totalorder %s39_s29, %s39_s29 }
  0x2b   :  { %p478_p5 = scmp.ne.s32.totalorder %s39_s29, %s477_s19  ;;  %p483_p7 = scmp.lt.s32.totalorder %s477_s19, %s477_s19 }
  0x2d   :  { %p484_p8 = por %p483_p7, %p482_p6 }
  0x2f   :  { %p485_p9 = pnand %p484_p8, %p478_p5 }
  0x31   :  { %488 = shalt.err (!%p485_p9)
}
  0x32   :  { %44 = dma.hbm_to_vmem [thread:$0]  %s618_s2, 2048, %s39_s29, [#allocation6], %s518_s22, %s518_s22, %s519_s23  }
  0x33   :  { %511 = dma.done.wait [#allocation3], 128  }
  0x34   :  { %512 = vsyncadd [#allocation3], 4294967168 }
  0x35   :  { %513 = dma.done.wait [#allocation6], 4096  }
  0x36   :  { %514 = vsyncadd [#allocation6], 4294963200  ;;  %v522_v0 = vmov 0.0|0.0   ;;  %vm523_vm0 = vmmov 0   ;;  %v524_v1 = vmov 0.0   ;;  %v55_v2 = vld [vmem:[#allocation5] sm:$0xff]  ;;  %v146_v42 = vlaneseq }
  0x37   :  { %364 = vmatprep.subr.bf16.mxu0 %v522_v0  ;;  %326 = vmatprep.mubr.msk.f32.mxu0 %vm523_vm0, %v524_v1  ;;  %v56_v3 = vld [vmem:[#allocation5 + $0x8] sm:$0xff]  ;;  %v57_v4 = vld [vmem:[#allocation5 + $0x10] sm:$0xff]  ;;  %v58_v6 = vld [vmem:[#allocation5 + $0x18] sm:$0xff]  ;;  %s525_s2 = smov [#allocation8]  }
  0x38   :  { %388 = vmatprep.subr.bf16.mxu1 %v522_v0  ;;  %361 = vmatprep.mubr.msk.f32.mxu1 %vm523_vm0, %v524_v1  ;;  %v365_v5 = vpack.c.bf16 %v56_v3, %v55_v2  ;;  %v368_v7 = vpack.c.bf16 %v58_v6, %v57_v4  ;;  %v59_v8 = vld [vmem:[#allocation5 + $0x20] sm:$0xff]  ;;  %v60_v9 = vld [vmem:[#allocation5 + $0x28] sm:$0xff]  ;;  %v61_v11 = vld [vmem:[#allocation5 + $0x30] sm:$0xff]  ;;  %v147_v43 = vand.u32 127, %v146_v42  ;;  %s250_s21 = sshll.u32 %s525_s2, 4  ;;  %s251_s21 = int_to_ptr.vmem [resolvable:$true] %s250_s21 }
  0x39   :  { %v371_v10 = vpack.c.bf16 %v60_v9, %v59_v8  ;;  %v62_v12 = vld [vmem:[#allocation5 + $0x38] sm:$0xff]  ;;  %v63_v14 = vld [vmem:[#allocation5 + $0x40] sm:$0xff]  ;;  %v64_v15 = vld [vmem:[#allocation5 + $0x48] sm:$0xff]  ;;  %s489_s22 = scalar_lea.vmem %s251_s21, 128  ;;  %p494_p11 = scmp.lt.s32.totalorder %s251_s21, %s251_s21 }
  0x3a   :  { %366 = vmatpush3.bf16.msra.mxu0 %v365_v5  ;;  %v374_v13 = vpack.c.bf16 %v62_v12, %v61_v11  ;;  %v377_v16 = vpack.c.bf16 %v64_v15, %v63_v14  ;;  %v65_v17 = vld [vmem:[#allocation5 + $0x50] sm:$0xff]  ;;  %v66_v18 = vld [vmem:[#allocation5 + $0x58] sm:$0xff]  ;;  %v67_v20 = vld [vmem:[#allocation5 + $0x60] sm:$0xff]  ;;  %vm148_vm1 = vcmp.lt.s32.totalorder %v147_v43, 64  ;;  %p490_p10 = scmp.ne.s32.totalorder %s251_s21, %s489_s22  ;;  %p495_p12 = scmp.lt.s32.totalorder %s489_s22, %s489_s22 }
  0x3b   :  { %367 = vmatprep.subr.bf16.mxu0 %v522_v0  ;;  %v380_v19 = vpack.c.bf16 %v66_v18, %v65_v17  ;;  %v68_v21 = vld [vmem:[#allocation5 + $0x68] sm:$0xff]  ;;  %v69_v23 = vld [vmem:[#allocation5 + $0x70] sm:$0xff]  ;;  %v70_v24 = vld [vmem:[#allocation5 + $0x78] sm:$0xff] }
  0x3c   :  { %v383_v22 = vpack.c.bf16 %v68_v21, %v67_v20  ;;  %v386_v25 = vpack.c.bf16 %v70_v24, %v69_v23  ;;  %v54_v26 = vld [vmem:[#allocation2] sm:$0xff]  ;;  %v157_v30 = vld [vmem:[#allocation7] sm:$0xff]  ;;  %v158_v31 = vld [vmem:[#allocation7 + $0x8] sm:$0xff]  ;;  %p496_p13 = por %p495_p12, %p494_p11 }
  0x3d   :  { %v159_v32 = vld [vmem:[#allocation7 + $0x10] sm:$0xff]  ;;  %v389_v33 = vpack.c.bf16 %v158_v31, %v157_v30  ;;  %v160_v34 = vld [vmem:[#allocation7 + $0x18] sm:$0xff]  ;;  %v161_v36 = vld [vmem:[#allocation7 + $0x20] sm:$0xff] }
  0x3e   :  { %369 = vmatpush3.bf16.msra.mxu0 %v368_v7  ;;  %v392_v35 = vpack.c.bf16 %v160_v34, %v159_v32  ;;  %v162_v37 = vld [vmem:[#allocation7 + $0x28] sm:$0xff]  ;;  %v163_v39 = vld [vmem:[#allocation7 + $0x30] sm:$0xff]  ;;  %v164_v40 = vld [vmem:[#allocation7 + $0x38] sm:$0xff]  ;;  %p497_p0 = pnand %p496_p13, %p490_p10 }
  0x3f   :  { %370 = vmatprep.subr.bf16.mxu0 %v522_v0  ;;  %390 = vmatpush3.bf16.msra.mxu1 %v389_v33  ;;  %v395_v38 = vpack.c.bf16 %v162_v37, %v161_v36  ;;  %v398_v41 = vpack.c.bf16 %v164_v40, %v163_v39  ;;  %v165_v49 = vld [vmem:[#allocation7 + $0x40] sm:$0xff]  ;;  %v166_v50 = vld [vmem:[#allocation7 + $0x48] sm:$0xff]  ;;  %v167_v52 = vld [vmem:[#allocation7 + $0x50] sm:$0xff] }
  0x40   :  { %391 = vmatprep.subr.bf16.mxu1 %v522_v0  ;;  %v401_v51 = vpack.c.bf16 %v166_v50, %v165_v49  ;;  %v168_v53 = vld [vmem:[#allocation7 + $0x58] sm:$0xff]  ;;  %v169_v55 = vld [vmem:[#allocation7 + $0x60] sm:$0xff]  ;;  %v170_v56 = vld [vmem:[#allocation7 + $0x68] sm:$0xff] }
  0x41   :  { %v404_v54 = vpack.c.bf16 %v168_v53, %v167_v52  ;;  %v407_v57 = vpack.c.bf16 %v170_v56, %v169_v55  ;;  %v171_v58 = vld [vmem:[#allocation7 + $0x70] sm:$0xff]  ;;  %v172_v59 = vld [vmem:[#allocation7 + $0x78] sm:$0xff] }
  0x42   :  { %372 = vmatpush3.bf16.msra.mxu0 %v371_v10  ;;  %v410_v60 = vpack.c.bf16 %v172_v59, %v171_v58 }
  0x43   :  { %373 = vmatprep.subr.bf16.mxu0 %v522_v0  ;;  %393 = vmatpush3.bf16.msra.mxu1 %v392_v35 }
  0x44   :  { %394 = vmatprep.subr.bf16.mxu1 %v522_v0 }
  0x46   :  { %375 = vmatpush3.bf16.msra.mxu0 %v374_v13 }
  0x47   :  { %376 = vmatprep.subr.bf16.mxu0 %v522_v0  ;;  %396 = vmatpush3.bf16.msra.mxu1 %v395_v38 }
  0x48   :  { %397 = vmatprep.subr.bf16.mxu1 %v522_v0 }
  0x4a   :  { %378 = vmatpush3.bf16.msra.mxu0 %v377_v16 }
  0x4b   :  { %379 = vmatprep.subr.bf16.mxu0 %v522_v0  ;;  %399 = vmatpush3.bf16.msra.mxu1 %v398_v41 }
  0x4c   :  { %400 = vmatprep.subr.bf16.mxu1 %v522_v0 }
  0x4e   :  { %381 = vmatpush3.bf16.msra.mxu0 %v380_v19 }
  0x4f   :  { %382 = vmatprep.subr.bf16.mxu0 %v522_v0  ;;  %402 = vmatpush3.bf16.msra.mxu1 %v401_v51 }
  0x50   :  { %403 = vmatprep.subr.bf16.mxu1 %v522_v0 }
  0x52   :  { %384 = vmatpush3.bf16.msra.mxu0 %v383_v22 }
  0x53   :  { %385 = vmatprep.subr.bf16.mxu0 %v522_v0  ;;  %405 = vmatpush3.bf16.msra.mxu1 %v404_v54 }
  0x54   :  { %406 = vmatprep.subr.bf16.mxu1 %v522_v0 }
  0x56   :  { %387 = vmatpush3.bf16.msra.mxu0 %v386_v25 }
  0x57   :  { %408 = vmatpush3.bf16.msra.mxu1 %v407_v57 }
  0x58   :  { %409 = vmatprep.subr.bf16.mxu1 %v522_v0 }
  0x59   :  { %327 = vmatmul.mubr.f32.vlgmr.msra.gmra.mrb[0].mxu0 %v54_v26 }
  0x5b   :  { %411 = vmatpush3.bf16.msra.mxu1 %v410_v60 }
 0x12c   :  { %v137_v27 = vpop.f32.mrb[0].mxu0 }
 0x12d   :  { %v141_v28 = vmul.f32 %v137_v27, %v137_v27  ;;  %v328_v29 = vpop.f32.mrb[1].mxu0 }
 0x12f   :  { %142 = vadd.xlane.f32.xlu0 %v141_v28 }
 0x1bc   :  { %v143_v44 = vpop.xlane.xlu0 %142 }
 0x1bd   :  { %v144_v45 = vmul.f32 0.015625, %v143_v44 }
 0x1bf   :  { %v145_v46 = vsub.f32 %v141_v28, %v144_v45 }
 0x1c1   :  { %v149_v47 = vsel %vm148_vm1, %v145_v46, 0.0 }
 0x1c2   :  { %v150_v48 = vmul.f32 %v149_v47, %v149_v47 }
 0x1c4   :  { %151 = vadd.xlane.f32.xlu0 %v150_v48 }
 0x251   :  { %v152_v61 = vpop.xlane.xlu0 %151 }
 0x252   :  { %v153_v62 = vmul.f32 0.015625, %v152_v61 }
 0x254   :  { %v154_v63 = vadd.f32 1e-05, %v153_v62 }
 0x256   :  { %421 = vrsqrt.f32 %v154_v63 }
 0x260   :  { %v422_v1 = vpop.eup %421 }
 0x261   :  { %v156_v2 = vmul.f32 %v422_v1, %v149_v47 }
 0x263   :  { %362 = vmatmul.mubr.f32.vlgmr.msra.gmra.mrb[0].mxu1 %v156_v2 }
 0x336   :  { %v239_v3 = vpop.f32.mrb[0].mxu1 }
 0x337   :  { %243 = vst [vmem:[#allocation8] sm:$0xff] %v239_v3  ;;  %v363_v4 = vpop.f32.mrb[1].mxu1 }
 0x338   :  { %500 = shalt.err (!%p497_p0)
}
 0x339   :  { %s501_s25 = scalar_lea.hbm %s619_s3, 128 }
 0x33a   :  { %p502_p1 = scmp.ne.s32.totalorder %s619_s3, %s501_s25  ;;  %p505_p2 = scmp.lt.u32.totalorder %s501_s25, %s619_s3 }
 0x33c   :  { %p507_p3 = pnand %p505_p2, %p502_p1 }
 0x33e   :  { %510 = shalt.err (!%p507_p3)
}
 0x33f   :  { %253 = dma.vmem_to_hbm [thread:$0]  %s251_s21, 128, %s619_s3, [#allocation4]  }
 0x340   :  { %515 = dma.done.wait [#allocation4], 128  }
 0x341   :  { %516 = vsyncadd [#allocation4], 4294967168 }
 0x342   :  { %257 = vsyncpa [#allocation3], 1 }
 0x343   :  { %258 = vsyncpa [#allocation6], 1 }
 0x344   :  { %259 = vsyncpa [#allocation4], 1 }

</bundles_post_ra>
